<compile_context>
chip_gen: v6e
topology: v6e:2x2x1
jax: 0.10.0
libtpu: 0.0.40
codegen_flags: <defaults>
</compile_context>

<pallas_src>
import functools

import jax
import jax.numpy as jnp
from jax.experimental import pallas as pl
from jax.experimental.pallas import tpu as pltpu


def _layernorm_kernel(alpha_ref, bias_ref, x_ref, o_ref, *, eps):
    # x_ref: (TR, H) tile in VMEM; alpha/bias: (1,) scalars in SMEM.
    x = x_ref[...].astype(jnp.float32)
    n = x.shape[-1]

    # Two-pass stats: mean first, then sum((x - mean)^2) on the tile already
    # resident in VMEM.  Costs one extra VPU pass (free in this HBM-bound
    # kernel) and avoids the one-pass cancellation problem.
    mean = jnp.sum(x, axis=-1, keepdims=True) * jnp.float32(1.0 / n)
    xc = x - mean
    # torch.std is unbiased (ddof=1); H == 1 gives NaN, matching torch.
    ddof_den = float(n - 1) if n > 1 else float("nan")
    var = jnp.sum(xc * xc, axis=-1, keepdims=True) * jnp.float32(1.0 / ddof_den)
    std = jnp.sqrt(var)

    alpha = alpha_ref[0].astype(jnp.float32)
    bias = bias_ref[0].astype(jnp.float32)

    # EUP reciprocal (otherwise-idle slot) + one Newton refinement step to
    # recover ~full f32 accuracy; operates on a (TR, 1) column, so it's free.
    denom = std + jnp.float32(eps)
    r = pl.reciprocal(denom, approx=True)
    r = r * (jnp.float32(2.0) - denom * r)
    scale = alpha * r

    o_ref[...] = (xc * scale + bias).astype(o_ref.dtype)


def _round_up(v, m):
    return ((v + m - 1) // m) * m


def _round_down(v, m):
    return (v // m) * m


def _chip_budget():
    """Per-generation tile/VMEM policy.

    Returns (target_f32_tile_bytes, vmem_budget_bytes, min_steps).
    """
    kind = ""
    try:
        kind = jax.devices()[0].device_kind.lower()
    except Exception:
        pass
    vmem_cap = None
    try:
        info = pltpu.get_tpu_info()
        for name in ("vmem_capacity_bytes", "vmem_size_bytes", "vmem_bytes"):
            v = getattr(info, name, None)
            if isinstance(v, int) and v > 0:
                vmem_cap = v
                break
    except Exception:
        pass

    is_v7 = ("7" in kind) or (vmem_cap is not None and vmem_cap <= (64 << 20))
    big_vmem = (vmem_cap is not None and vmem_cap >= (128 << 20)) or \
               ("v5" in kind) or ("v6" in kind)

    if big_vmem and not is_v7:
        # v5e / v6e: 128 MiB physical VMEM (default scoped limit is only
        # 16/32 MiB, so the explicit limit matters), 1 TensorCore per chip ->
        # megacore sharding gains nothing; 2 grid steps keep the pipeline full.
        return 12 << 20, 100 << 20, 2
    # v7x (or unknown -> conservative): 64 MiB physical VMEM per TC -> budget
    # ~52 MiB total with headroom for Mosaic-internal scratch; 2 TCs per chip
    # -> keep >= 4 grid steps so the parallel axis shards + pipelines.
    return 6 << 20, 52 << 20, 4


def _pick_row_tile(rows, h, itemsize, target_f32_bytes, vmem_budget, min_steps):
    """Big row tiles for HBM bandwidth, capped only by the chip VMEM budget."""
    # Minimum sublane multiple per dtype packing (f32: 8, bf16: 16, int8: 32).
    sub = max(8, 32 // itemsize)

    # Byte-derived target (no arbitrary row-count cap): tile DMA time should
    # dwarf the ~0.35us fixed per-grid-step overhead.
    rt = max(sub, _round_down(target_f32_bytes // (h * 4), sub))

    # Cap so that double-buffered in/out tiles + ~3 f32 temporaries stay
    # inside the chip VMEM budget (minus a fixed margin).
    per_row_bytes = h * (4 * itemsize + 3 * 4)
    rt_budget = _round_down(max(vmem_budget - (4 << 20), 0) // per_row_bytes, sub)
    if rt_budget >= sub:
        rt = min(rt, rt_budget)

    # Keep at least `min_steps` grid steps when the problem is big enough so
    # the pipeline (and, on v7x, both TensorCores) stays busy.
    if rows >= sub * min_steps:
        rt = min(rt, max(sub, _round_down(rows // min_steps, sub)))

    # Never larger than the (rounded-up) number of rows.
    rt = min(rt, _round_up(rows, sub))
    return max(rt, sub)


def layer_norm(x, alpha, bias, eps=1e-6, row_tile=None):
    """Pallas LayerNormalization matching the PyTorch reference:
    y = alpha * (x - mean) / (std + eps) + bias, std unbiased, scalar alpha/bias.
    """
    orig_shape = x.shape
    h = orig_shape[-1]
    rows = 1
    for d in orig_shape[:-1]:
        rows *= d
    x2 = x.reshape(rows, h)

    itemsize = jnp.dtype(x.dtype).itemsize
    target_f32_bytes, vmem_budget, min_steps = _chip_budget()
    if row_tile is None:
        row_tile = _pick_row_tile(rows, h, itemsize, target_f32_bytes,
                                  vmem_budget, min_steps)

    grid = (pl.cdiv(rows, row_tile),)  # ragged last block masked by Pallas

    # Scoped VMEM sized for double-buffered in/out tiles + f32 working set.
    tile_io = row_tile * h * itemsize
    tile_f32 = row_tile * h * 4
    vmem_need = 4 * tile_io + 3 * tile_f32 + (2 << 20)
    vmem_limit = int(min(max(vmem_need, 32 << 20), vmem_budget))

    kernel = functools.partial(_layernorm_kernel, eps=eps)

    # TODO(synk): for very narrow H (< 128) a wrapper-side lane-dense repack
    # (pack 128//H rows per lane group + segmented reduction) would avoid
    # masked partial stores; per-row semantics stay correct without it.
    out = pl.pallas_call(
        kernel,
        out_shape=jax.ShapeDtypeStruct((rows, h), x.dtype),
        grid_spec=pltpu.PrefetchScalarGridSpec(
            num_scalar_prefetch=0,
            grid=grid,
            in_specs=[
                pl.BlockSpec(memory_space=pltpu.SMEM),   # alpha (1,)
                pl.BlockSpec(memory_space=pltpu.SMEM),   # bias  (1,)
                pl.BlockSpec((row_tile, h), lambda i: (i, 0)),
            ],
            out_specs=pl.BlockSpec((row_tile, h), lambda i: (i, 0)),
        ),
        compiler_params=pltpu.CompilerParams(
            dimension_semantics=("parallel",),
            vmem_limit_bytes=vmem_limit,
        ),
    )(alpha, bias, x2)

    return out.reshape(orig_shape)


if __name__ == "__main__":
    key = jax.random.PRNGKey(0)
    # Small shape consistent with the module: batch=2, seq=8, hidden=32
    x = jax.random.normal(key, (2, 8, 32), dtype=jnp.float32)

    # Deterministic parameter init (matches nn.Parameter(torch.ones(1)/zeros(1)))
    alpha = jnp.ones((1,), dtype=jnp.float32)
    bias = jnp.zeros((1,), dtype=jnp.float32)
    eps = 1e-6

    out = layer_norm(x, alpha, bias, eps=eps)
    jax.block_until_ready(out)

    # Reference in plain JAX (torch.std -> unbiased, ddof=1)
    mean = jnp.mean(x, axis=-1, keepdims=True)
    std = jnp.std(x, axis=-1, keepdims=True, ddof=1)
    ref = alpha[0] * (x - mean) / (std + eps) + bias[0]
    assert jnp.allclose(out, ref, atol=1e-4, rtol=1e-5), "mismatch vs reference"

    print("KERNEL_OK")
</pallas_src>

<mosaic_0001>
module attributes {stable_mosaic.version = 11 : i64} {
  func.func @_layernorm_kernel(%arg0: i32, %arg1: memref<1xf32, #tpu.memory_space<smem>>, %arg2: memref<1xf32, #tpu.memory_space<smem>>, %arg3: memref<16x32xf32, #tpu.memory_space<vmem>>, %arg4: memref<16x32xf32, #tpu.memory_space<vmem>>) attributes {dimension_semantics = [#tpu.dimension_semantics<parallel>], iteration_bounds = array<i64: 1>, scalar_prefetch = 0 : i64, scratch_operands = 0 : i64, tpu.core_type = #tpu.core_type<tc>, window_params = [{transform_indices = @transform_0, window_bounds = array<i64: 1>}, {transform_indices = @transform_1, window_bounds = array<i64: 1>}, {transform_indices = @transform_2, window_bounds = array<i64: 16, 32>}, {transform_indices = @transform_3, window_bounds = array<i64: 16, 32>}]} {
    %c0 = arith.constant 0 : index
    %c0_0 = arith.constant 0 : index
    %0 = vector.load %arg3[%c0, %c0_0] : memref<16x32xf32, #tpu.memory_space<vmem>>, vector<16x32xf32>
    %cst = arith.constant dense<0.000000e+00> : vector<16xf32>
    %1 = vector.multi_reduction <add>, %0, %cst [1] : vector<16x32xf32> to vector<16xf32>
    %2 = vector.shape_cast %1 : vector<16xf32> to vector<16x1xf32>
    %cst_1 = arith.constant 3.125000e-02 : f32
    %3 = vector.broadcast %cst_1 : f32 to vector<16x1xf32>
    %4 = arith.mulf %2, %3 : vector<16x1xf32>
    %5 = vector.broadcast %4 : vector<16x1xf32> to vector<16x32xf32>
    %6 = arith.subf %0, %5 : vector<16x32xf32>
    %7 = arith.mulf %6, %6 : vector<16x32xf32>
    %cst_2 = arith.constant dense<0.000000e+00> : vector<16xf32>
    %8 = vector.multi_reduction <add>, %7, %cst_2 [1] : vector<16x32xf32> to vector<16xf32>
    %9 = vector.shape_cast %8 : vector<16xf32> to vector<16x1xf32>
    %cst_3 = arith.constant 0.0322580636 : f32
    %10 = vector.broadcast %cst_3 : f32 to vector<16x1xf32>
    %11 = arith.mulf %9, %10 : vector<16x1xf32>
    %12 = math.sqrt %11 : vector<16x1xf32>
    %c0_4 = arith.constant 0 : index
    %13 = memref.load %arg1[%c0_4] : memref<1xf32, #tpu.memory_space<smem>>
    %c0_5 = arith.constant 0 : index
    %14 = memref.load %arg2[%c0_5] : memref<1xf32, #tpu.memory_space<smem>>
    %cst_6 = arith.constant 9.99999997E-7 : f32
    %15 = vector.broadcast %cst_6 : f32 to vector<16x1xf32>
    %16 = arith.addf %12, %15 : vector<16x1xf32>
    %17 = tpu.reciprocal %16 {approx = true} : vector<16x1xf32> -> vector<16x1xf32>
    %18 = arith.mulf %16, %17 : vector<16x1xf32>
    %cst_7 = arith.constant 2.000000e+00 : f32
    %19 = vector.broadcast %cst_7 : f32 to vector<16x1xf32>
    %20 = arith.subf %19, %18 : vector<16x1xf32>
    %21 = arith.mulf %17, %20 : vector<16x1xf32>
    %22 = vector.broadcast %13 : f32 to vector<16x1xf32>
    %23 = arith.mulf %22, %21 : vector<16x1xf32>
    %24 = vector.broadcast %23 : vector<16x1xf32> to vector<16x32xf32>
    %25 = arith.mulf %6, %24 : vector<16x32xf32>
    %26 = vector.broadcast %14 : f32 to vector<16x32xf32>
    %27 = arith.addf %25, %26 : vector<16x32xf32>
    %c0_8 = arith.constant 0 : index
    %c0_9 = arith.constant 0 : index
    %28 = vector.load %arg4[%c0_8, %c0_9] : memref<16x32xf32, #tpu.memory_space<vmem>>, vector<16x32xf32>
    tpu.vector_store %arg4[%c0_8, %c0_9], %27 {strides = array<i32>} : memref<16x32xf32, #tpu.memory_space<vmem>>, vector<16x32xf32>,
    return
  }
  func.func @transform_0(%arg0: i32) -> i32 {
    %c0_i32 = arith.constant 0 : i32
    %c0_i32_0 = arith.constant 0 : i32
    return %c0_i32 : i32
  }
  func.func @transform_1(%arg0: i32) -> i32 {
    %c0_i32 = arith.constant 0 : i32
    %c0_i32_0 = arith.constant 0 : i32
    return %c0_i32 : i32
  }
  func.func @transform_2(%arg0: i32) -> (i32, i32) {
    %c0_i32 = arith.constant 0 : i32
    %c0_i32_0 = arith.constant 0 : i32
    return %arg0, %c0_i32 : i32, i32
  }
  func.func @transform_3(%arg0: i32) -> (i32, i32) {
    %c0_i32 = arith.constant 0 : i32
    %c0_i32_0 = arith.constant 0 : i32
    return %arg0, %c0_i32 : i32, i32
  }
}

</mosaic_0001>

<bundles_post_ra>
// kernel: tpu_custom_call.1
= control target key start
LH: loop header
LB: loop body
LE: loop exit
PB: predicated region body
PF: predicated region fallthrough
CT: control target
= control target key end

     0   :  { %10 = vsyncpa [#allocation5], 0  ;;  %s211_s0 = inlined_call_operand.<no memory space> [shape: f32[1], index: 0, kind: input, shape index: {}]   ;;  %s212_s1 = inlined_call_operand.<no memory space> [shape: f32[1], index: 1, kind: input, shape index: {}]   ;;  %s213_s2 = inlined_call_operand.hbm [shape: f32[16,32], index: 2, kind: input, shape index: {}]   ;;  %s214_s3 = inlined_call_operand.hbm [shape: f32[16,32], index: 3, kind: output, shape index: {}]  }
   0x1   :  { %11 = vsyncpa [#allocation6], 0  ;;  %s163_s12 = smov [#allocation4]  }
   0x2   :  { %s21_s13 = sshll.u32 %s163_s12, 4  ;;  %s22_s13 = int_to_ptr.vmem [resolvable:$true] %s21_s13 }
   0x3   :  { %s127_s14 = scalar_lea.vmem %s22_s13, 256  ;;  %p132_p1 = scmp.lt.s32.totalorder %s22_s13, %s22_s13 }
   0x4   :  { %p128_p0 = scmp.ne.s32.totalorder %s22_s13, %s127_s14  ;;  %p133_p2 = scmp.lt.s32.totalorder %s127_s14, %s127_s14 }
   0x6   :  { %p134_p3 = por %p133_p2, %p132_p1 }
   0x8   :  { %p135_p4 = pnand %p134_p3, %p128_p0 }
   0xa   :  { %138 = shalt.err (!%p135_p4)
}
   0xb   :  { %s164_s15 = smov 128   ;;  %s165_s16 = smov 8  }
   0xc   :  { %27 = dma.hbm_to_vmem [thread:$0]  %s213_s2, 256, %s22_s13, [#allocation5], %s164_s15, %s164_s15, %s165_s16  }
   0xd   :  { %159 = dma.done.wait [#allocation5], 256  }
   0xe   :  { %160 = vsyncadd [#allocation5], 4294967040  ;;  %vm33_vm0 = vcmask 261120   ;;  %v31_v0 = vld [vmem:[#allocation4] sm:$0xff]  ;;  %v32_v1 = vld [vmem:[#allocation4 + $0x8] sm:$0xff]  ;;  %v80_v34 = vstv %s211_s0  ;;  %v85_v39 = vstv %s212_s1  ;;  %s166_s22 = smov [#allocation7]  }
   0xf   :  { %v34_v2 = vsel %vm33_vm0, %v31_v0, 0.0  ;;  %v37_v3 = vsel %vm33_vm0, %v32_v1, 0.0  ;;  %s95_s23 = sshll.u32 %s166_s22, 4  ;;  %s96_s23 = int_to_ptr.vmem [resolvable:$true] %s95_s23 }
  0x10   :  { %35 = vadd.xlane.f32.xlu0 %v34_v2  ;;  %s139_s0 = scalar_lea.vmem %s96_s23, 256  ;;  %p144_p6 = scmp.lt.s32.totalorder %s96_s23, %s96_s23 }
  0x11   :  { %p140_p5 = scmp.ne.s32.totalorder %s96_s23, %s139_s0  ;;  %p145_p7 = scmp.lt.s32.totalorder %s139_s0, %s139_s0 }
  0x13   :  { %p146_p8 = por %p145_p7, %p144_p6 }
  0x14   :  { %38 = vadd.xlane.f32.xlu0 %v37_v3 }
  0x15   :  { %p147_p9 = pnand %p146_p8, %p140_p5 }
  0x99   :  { %v36_v4 = vpop.xlane.xlu0 %35 }
  0x9a   :  { %v40_v5 = vmul.f32 0.03125, %v36_v4 }
  0x9c   :  { %v42_v6 = vsub.f32 %v31_v0, %v40_v5 }
  0x9d   :  { %v39_v7 = vpop.xlane.xlu0 %38 }
  0x9e   :  { %v41_v8 = vmul.f32 0.03125, %v39_v7  ;;  %v44_v9 = vmul.f32 %v42_v6, %v42_v6 }
  0xa0   :  { %v43_v10 = vsub.f32 %v32_v1, %v41_v8  ;;  %v46_v11 = vsel %vm33_vm0, %v44_v9, 0.0 }
  0xa1   :  { %47 = vadd.xlane.f32.xlu1 %v46_v11 }
  0xa2   :  { %v45_v12 = vmul.f32 %v43_v10, %v43_v10 }
  0xa4   :  { %v49_v13 = vsel %vm33_vm0, %v45_v12, 0.0 }
  0xa5   :  { %50 = vadd.xlane.f32.xlu1 %v49_v13 }
 0x12a   :  { %v48_v14 = vpop.xlane.xlu1 %47 }
 0x12b   :  { %v52_v15 = vmul.f32 0.032258064, %v48_v14 }
 0x12d   :  { %111 = vrsqrt.f32 %v52_v15  ;;  %vm56_vm1 = vcmp.eq.f32.partialorder %v52_v15, inf  ;;  %v59_v20 = vand.u32 2147483648, %v52_v15  ;;  %vm58_vm2 = vcmp.eq.f32.partialorder %v52_v15, 0.0 }
 0x12e   :  { %v51_v16 = vpop.xlane.xlu1 %50 }
 0x12f   :  { %v53_v17 = vmul.f32 0.032258064, %v51_v16 }
 0x131   :  { %113 = vrsqrt.f32 %v53_v17  ;;  %vm63_vm3 = vcmp.eq.f32.partialorder %v53_v17, inf  ;;  %v66_v26 = vand.u32 2147483648, %v53_v17  ;;  %vm65_vm4 = vcmp.eq.f32.partialorder %v53_v17, 0.0 }
 0x13a   :  { %v112_v18 = vpop.eup %111 }
 0x13b   :  { %v55_v19 = vmul.f32 %v112_v18, %v52_v15 }
 0x13d   :  { %v57_v21 = vsel %vm56_vm1, %v52_v15, %v55_v19 }
 0x13e   :  { %v114_v22 = vpop.eup %113  ;;  %v60_v23 = vsel %vm58_vm2, %v59_v20, %v57_v21 }
 0x13f   :  { %v62_v24 = vmul.f32 %v114_v22, %v53_v17  ;;  %v70_v25 = vadd.f32 1e-06, %v60_v23 }
 0x141   :  { %v64_v27 = vsel %vm63_vm3, %v53_v17, %v62_v24  ;;  %115 = vrcp.f32 %v70_v25 }
 0x142   :  { %v67_v28 = vsel %vm65_vm4, %v66_v26, %v64_v27 }
 0x143   :  { %v71_v29 = vadd.f32 1e-06, %v67_v28 }
 0x145   :  { %117 = vrcp.f32 %v71_v29 }
 0x14e   :  { %v116_v30 = vpop.eup %115 }
 0x14f   :  { %v74_v31 = vmul.f32 %v116_v30, %v70_v25 }
 0x151   :  { %v76_v32 = vsub.f32 2.0, %v74_v31 }
 0x152   :  { %v118_v33 = vpop.eup %117 }
 0x153   :  { %v75_v35 = vmul.f32 %v118_v33, %v71_v29  ;;  %v78_v36 = vmul.f32 %v116_v30, %v76_v32 }
 0x155   :  { %v77_v37 = vsub.f32 2.0, %v75_v35  ;;  %v81_v38 = vmul.f32 %v80_v34, %v78_v36 }
 0x157   :  { %v79_v40 = vmul.f32 %v118_v33, %v77_v37  ;;  %v83_v41 = vmul.f32 %v81_v38, %v42_v6 }
 0x159   :  { %v82_v42 = vmul.f32 %v80_v34, %v79_v40  ;;  %v86_v43 = vadd.f32 %v85_v39, %v83_v41 }
 0x15b   :  { %v84_v44 = vmul.f32 %v82_v42, %v43_v10  ;;  %88 = vst.msk [vmem:[#allocation7] sm:$0xff] %vm33_vm0, %v86_v43 }
 0x15d   :  { %v87_v45 = vadd.f32 %v85_v39, %v84_v44 }
 0x15f   :  { %89 = vst.msk [vmem:[#allocation7 + $0x8] sm:$0xff] %vm33_vm0, %v87_v45 }
 0x160   :  { %150 = shalt.err (!%p147_p9)
}
 0x161   :  { %101 = dma.vmem_to_hbm [thread:$0]  %s96_s23, 256, %s214_s3, [#allocation6], %s164_s15, %s164_s15, %s165_s16  }
 0x162   :  { %161 = dma.done.wait [#allocation6], 256  }
 0x163   :  { %162 = vsyncadd [#allocation6], 4294967040 }
 0x164   :  { %105 = vsyncpa [#allocation5], 1 }
 0x165   :  { %106 = vsyncpa [#allocation6], 1 }

</bundles_post_ra>
